<compile_context>
chip_gen: v6e
topology: v6e:2x2x1
jax: 0.10.0
libtpu: 0.0.40
codegen_flags: <defaults>
</compile_context>

<pallas_src>
import functools

import jax
import jax.numpy as jnp
from jax.experimental import pallas as pl
from jax.experimental.pallas import tpu as pltpu

_LN_EPS = 1e-5
_INV_SQRT2 = 0.7071067811865476
_GELU_K = 0.7978845608028654  # sqrt(2/pi)


def _resblock_kernel(x_ref, g_ref, b_ref, w1_ref, b1_ref, w2_ref, b2_ref,
                     o_ref, xn_ref, acc_ref, *, exact_gelu, mxu_dtype):
    """One (TM, C) row tile; hidden dim streamed in TH chunks on grid axis 1."""
    k = pl.program_id(1)

    @pl.when(k == 0)
    def _():
        # LayerNorm over channels, single pass (E[x], E[x^2]), f32 on the VPU.
        x = x_ref[...].astype(jnp.float32)                    # (TM, C)
        mean = jnp.mean(x, axis=-1, keepdims=True)
        var = jnp.mean(x * x, axis=-1, keepdims=True) - mean * mean
        xn = (x - mean) * jax.lax.rsqrt(var + _LN_EPS)
        xn = xn * g_ref[...] + b_ref[...]                      # affine (gamma, beta)
        # bf16 copy feeds the MXU; the f32 residual (+ second bias, added once)
        # seeds the accumulator so no f32 xn tile stays live across the loop.
        xn_ref[...] = xn.astype(xn_ref.dtype)
        acc_ref[...] = xn + b2_ref[...]

    # Hidden chunk k:  h_k = GELU(xn @ W1[:, k]);  acc += h_k @ W2[k, :]
    h = jnp.dot(xn_ref[...], w1_ref[...],
                preferred_element_type=jnp.float32) + b1_ref[...]
    if exact_gelu:
        h = 0.5 * h * (1.0 + jax.lax.erf(h * _INV_SQRT2))
    else:
        # tanh approximation (== nn.GELU(approximate='tanh')); tanh -> EUP slot.
        h = 0.5 * h * (1.0 + jnp.tanh(_GELU_K * (h + 0.044715 * h * h * h)))
    acc_ref[...] += jnp.dot(h.astype(mxu_dtype), w2_ref[...],
                            preferred_element_type=jnp.float32)

    @pl.when(k == pl.num_programs(1) - 1)
    def _():
        o_ref[...] = acc_ref[...].astype(o_ref.dtype)


def _round_up(n, m):
    return (n + m - 1) // m * m


def _pick_tm(rows, tile_rows):
    """Row tile: minimize zero padding; tie-break prefers 128-aligned, then larger."""
    rows8 = _round_up(rows, 8)
    if rows8 <= tile_rows:
        return rows8
    best = None
    for tm in range(tile_rows, 63, -8):
        pad = _round_up(rows, tm) - rows
        key = (pad, 0 if tm % 128 == 0 else 1, -tm)
        if best is None or key < best[0]:
            best = (key, tm)
    return best[1]


def _pick_th(channels, hidden_tile):
    """Hidden-dim chunk: a multiple of 128 dividing C, else the whole axis."""
    if channels <= hidden_tile or channels % 128 != 0:
        return channels
    th = (min(hidden_tile, channels) // 128) * 128
    while th >= 128 and channels % th != 0:
        th -= 128
    return th if th >= 128 else channels


def _physical_vmem_bytes():
    try:
        info = pltpu.get_tpu_info()
        for attr in ("vmem_capacity_bytes", "vmem_size_bytes", "vmem_bytes"):
            v = getattr(info, attr, None)
            if v:
                return int(v)
    except Exception:
        pass
    return 64 * 1024 * 1024  # conservative fallback: v7x per-TensorCore VMEM


@functools.partial(
    jax.jit,
    static_argnames=("tile_rows", "hidden_tile", "exact_gelu", "mxu_dtype"))
def simple_res_block(x, gamma, beta, w1, b1, w2, b2, *,
                     tile_rows=256, hidden_tile=512,
                     exact_gelu=True, mxu_dtype=jnp.bfloat16):
    """x: (B, S, C).  gamma/beta/b1/b2: (C,).  w1/w2: (C_in, C_out)."""
    B, S, C = x.shape
    rows = B * S

    tm = _pick_tm(rows, tile_rows)
    th = _pick_th(C, hidden_tile)
    rows_p = _round_up(rows, tm)
    n_rows = rows_p // tm
    n_k = C // th

    x2 = x.reshape(rows, C)
    if rows_p != rows:
        x2 = jnp.pad(x2, ((0, rows_p - rows), (0, 0)))

    # 2-D (1, C) f32 views so params broadcast against (TM, C) / (TM, TH) tiles.
    g2 = gamma.reshape(1, C).astype(jnp.float32)
    be2 = beta.reshape(1, C).astype(jnp.float32)
    b1_2 = b1.reshape(1, C).astype(jnp.float32)
    b2_2 = b2.reshape(1, C).astype(jnp.float32)
    # Cast weights to the MXU dtype once, outside the kernel.
    w1m = w1.astype(mxu_dtype)
    w2m = w2.astype(mxu_dtype)

    resident = pl.Buffered(1)                      # constant across the whole grid
    w_mode = pl.Buffered(1) if n_k == 1 else None  # stream (double-buffer) when k-tiled

    def _spec(shape, idx, mode=None):
        if mode is None:
            return pl.BlockSpec(shape, idx)
        return pl.BlockSpec(shape, idx, pipeline_mode=mode)

    row_spec = pl.BlockSpec((tm, C), lambda i, k: (i, 0))
    in_specs = [
        row_spec,                                          # x
        _spec((1, C), lambda i, k: (0, 0), resident),      # gamma
        _spec((1, C), lambda i, k: (0, 0), resident),      # beta
        _spec((C, th), lambda i, k: (0, k), w_mode),       # w1 column block
        _spec((1, th), lambda i, k: (0, k), w_mode),       # b1 chunk
        _spec((th, C), lambda i, k: (k, 0), w_mode),       # w2 row block
        _spec((1, C), lambda i, k: (0, 0), resident),      # b2
    ]

    itemsize = jnp.dtype(x.dtype).itemsize
    w_itemsize = jnp.dtype(mxu_dtype).itemsize
    w_bufs = 1 if n_k == 1 else 2
    vmem_needed = (
        2 * tm * C * itemsize                 # x tile (double-buffered)
        + 2 * tm * C * itemsize               # out tile
        + w_bufs * 2 * C * th * w_itemsize    # w1 + w2 blocks
        + tm * C * (w_itemsize + 4)           # xn (mxu dtype) + f32 accumulator
        + 8 * C * 4                           # small vectors (layout-padded)
        + (2 << 20)                           # Mosaic internal scratch slack
    )
    phys = _physical_vmem_bytes()
    vmem_limit = int(min(max(vmem_needed * 5 // 4, 32 << 20), phys - (8 << 20)))

    cost = pl.CostEstimate(
        flops=4 * rows_p * C * C,                              # two C x C matmuls
        transcendentals=rows_p * C,                            # one erf/tanh per hidden elem
        bytes_accessed=2 * rows_p * C * itemsize + 2 * C * C * w_itemsize,
    )

    kernel = functools.partial(_resblock_kernel,
                               exact_gelu=exact_gelu, mxu_dtype=mxu_dtype)

    out = pl.pallas_call(
        kernel,
        out_shape=jax.ShapeDtypeStruct((rows_p, C), x.dtype),
        grid_spec=pltpu.PrefetchScalarGridSpec(
            num_scalar_prefetch=0,
            grid=(n_rows, n_k),
            in_specs=in_specs,
            out_specs=row_spec,
            scratch_shapes=[pltpu.VMEM((tm, C), mxu_dtype),     # cached LN output
                            pltpu.VMEM((tm, C), jnp.float32)],  # accumulator
        ),
        compiler_params=pltpu.CompilerParams(
            dimension_semantics=("parallel", "arbitrary"),
            vmem_limit_bytes=vmem_limit,
        ),
        cost_estimate=cost,
    )(x2, g2, be2, w1m, b1_2, w2m, b2_2)

    if rows_p != rows:
        out = out[:rows]
    return out.reshape(B, S, C)


def _reference(x, gamma, beta, w1, b1, w2, b2):
    """Exact f32 / erf-GELU reference matching the PyTorch module."""
    mean = jnp.mean(x, axis=-1, keepdims=True)
    var = jnp.mean(jnp.square(x - mean), axis=-1, keepdims=True)
    xn = (x - mean) / jnp.sqrt(var + _LN_EPS) * gamma + beta
    h = xn @ w1 + b1
    h = 0.5 * h * (1.0 + jax.lax.erf(h * _INV_SQRT2))
    y = h @ w2 + b2
    return xn + y


if __name__ == "__main__":
    B, S, C = 2, 8, 32  # small demo shapes; channels = LayerNorm/Linear width

    key = jax.random.PRNGKey(0)
    kx, kg, kb, kw1, kb1, kw2, kb2 = jax.random.split(key, 7)

    x = jax.random.normal(kx, (B, S, C), dtype=jnp.float32)
    gamma = 1.0 + 0.1 * jax.random.normal(kg, (C,), dtype=jnp.float32)
    beta = 0.1 * jax.random.normal(kb, (C,), dtype=jnp.float32)
    w1 = jax.random.normal(kw1, (C, C), dtype=jnp.float32) / jnp.sqrt(C)  # (in, out)
    b1 = 0.1 * jax.random.normal(kb1, (C,), dtype=jnp.float32)
    w2 = jax.random.normal(kw2, (C, C), dtype=jnp.float32) / jnp.sqrt(C)  # (in, out)
    b2 = 0.1 * jax.random.normal(kb2, (C,), dtype=jnp.float32)

    out = simple_res_block(x, gamma, beta, w1, b1, w2, b2)
    out = jax.block_until_ready(out)

    # Exact erf GELU + f32 LN/residual; only bf16 MXU operands deviate.
    ref = _reference(x, gamma, beta, w1, b1, w2, b2)
    assert out.shape == (B, S, C)
    assert jnp.allclose(out, ref, atol=3e-2, rtol=3e-2), "mismatch vs JAX reference"

    print("KERNEL_OK")
</pallas_src>

<mosaic_0001>
module attributes {stable_mosaic.version = 11 : i64} {
  func.func @_resblock_kernel(%arg0: i32, %arg1: i32, %arg2: memref<16x32xf32, #tpu.memory_space<vmem>>, %arg3: memref<1x32xf32, #tpu.memory_space<vmem>>, %arg4: memref<1x32xf32, #tpu.memory_space<vmem>>, %arg5: memref<32x32xbf16, #tpu.memory_space<vmem>>, %arg6: memref<1x32xf32, #tpu.memory_space<vmem>>, %arg7: memref<32x32xbf16, #tpu.memory_space<vmem>>, %arg8: memref<1x32xf32, #tpu.memory_space<vmem>>, %arg9: memref<16x32xf32, #tpu.memory_space<vmem>>, %arg10: memref<16x32xbf16, #tpu.memory_space<vmem>>, %arg11: memref<16x32xf32, #tpu.memory_space<vmem>>) attributes {dimension_semantics = [#tpu.dimension_semantics<parallel>, #tpu.dimension_semantics<arbitrary>], iteration_bounds = array<i64: 1, 1>, scalar_prefetch = 0 : i64, scratch_operands = 2 : i64, tpu.core_type = #tpu.core_type<tc>, window_params = [{transform_indices = @transform_0, window_bounds = array<i64: 16, 32>}, {pipeline_mode = #tpu.pipeline_mode<synchronous>, transform_indices = @transform_1, window_bounds = array<i64: 1, 32>}, {pipeline_mode = #tpu.pipeline_mode<synchronous>, transform_indices = @transform_2, window_bounds = array<i64: 1, 32>}, {pipeline_mode = #tpu.pipeline_mode<synchronous>, transform_indices = @transform_3, window_bounds = array<i64: 32, 32>}, {pipeline_mode = #tpu.pipeline_mode<synchronous>, transform_indices = @transform_4, window_bounds = array<i64: 1, 32>}, {pipeline_mode = #tpu.pipeline_mode<synchronous>, transform_indices = @transform_5, window_bounds = array<i64: 32, 32>}, {pipeline_mode = #tpu.pipeline_mode<synchronous>, transform_indices = @transform_6, window_bounds = array<i64: 1, 32>}, {transform_indices = @transform_7, window_bounds = array<i64: 16, 32>}]} {
    %c0_i32 = arith.constant 0 : i32
    %0 = arith.cmpi eq, %arg1, %c0_i32 : i32
    %1 = arith.extui %0 : i1 to i32
    %c0_i32_0 = arith.constant 0 : i32
    %2 = arith.cmpi ne, %1, %c0_i32_0 : i32
    scf.if %2 {
      %c0_18 = arith.constant 0 : index
      %c0_19 = arith.constant 0 : index
      %26 = vector.load %arg2[%c0_18, %c0_19] : memref<16x32xf32, #tpu.memory_space<vmem>>, vector<16x32xf32>
      %cst_20 = arith.constant dense<0.000000e+00> : vector<16xf32>
      %27 = vector.multi_reduction <add>, %26, %cst_20 [1] : vector<16x32xf32> to vector<16xf32>
      %28 = vector.shape_cast %27 : vector<16xf32> to vector<16x1xf32>
      %cst_21 = arith.constant 3.200000e+01 : f32
      %29 = vector.broadcast %cst_21 : f32 to vector<16x1xf32>
      %30 = arith.divf %28, %29 : vector<16x1xf32>
      %31 = arith.mulf %26, %26 : vector<16x32xf32>
      %cst_22 = arith.constant dense<0.000000e+00> : vector<16xf32>
      %32 = vector.multi_reduction <add>, %31, %cst_22 [1] : vector<16x32xf32> to vector<16xf32>
      %33 = vector.shape_cast %32 : vector<16xf32> to vector<16x1xf32>
      %cst_23 = arith.constant 3.200000e+01 : f32
      %34 = vector.broadcast %cst_23 : f32 to vector<16x1xf32>
      %35 = arith.divf %33, %34 : vector<16x1xf32>
      %36 = arith.mulf %30, %30 : vector<16x1xf32>
      %37 = arith.subf %35, %36 : vector<16x1xf32>
      %38 = vector.broadcast %30 : vector<16x1xf32> to vector<16x32xf32>
      %39 = arith.subf %26, %38 : vector<16x32xf32>
      %cst_24 = arith.constant 9.99999974E-6 : f32
      %40 = vector.broadcast %cst_24 : f32 to vector<16x1xf32>
      %41 = arith.addf %37, %40 : vector<16x1xf32>
      %42 = math.rsqrt %41 : vector<16x1xf32>
      %43 = vector.broadcast %42 : vector<16x1xf32> to vector<16x32xf32>
      %44 = arith.mulf %39, %43 : vector<16x32xf32>
      %c0_25 = arith.constant 0 : index
      %c0_26 = arith.constant 0 : index
      %45 = vector.load %arg3[%c0_25, %c0_26] : memref<1x32xf32, #tpu.memory_space<vmem>>, vector<1x32xf32>
      %46 = vector.broadcast %45 : vector<1x32xf32> to vector<16x32xf32>
      %47 = arith.mulf %44, %46 : vector<16x32xf32>
      %c0_27 = arith.constant 0 : index
      %c0_28 = arith.constant 0 : index
      %48 = vector.load %arg4[%c0_27, %c0_28] : memref<1x32xf32, #tpu.memory_space<vmem>>, vector<1x32xf32>
      %49 = vector.broadcast %48 : vector<1x32xf32> to vector<16x32xf32>
      %50 = arith.addf %47, %49 : vector<16x32xf32>
      %51 = arith.truncf %50 : vector<16x32xf32> to vector<16x32xbf16>
      %c0_29 = arith.constant 0 : index
      %c0_30 = arith.constant 0 : index
      %52 = vector.load %arg10[%c0_29, %c0_30] : memref<16x32xbf16, #tpu.memory_space<vmem>>, vector<16x32xbf16>
      tpu.vector_store %arg10[%c0_29, %c0_30], %51 {strides = array<i32>} : memref<16x32xbf16, #tpu.memory_space<vmem>>, vector<16x32xbf16>,
      %c0_31 = arith.constant 0 : index
      %c0_32 = arith.constant 0 : index
      %53 = vector.load %arg8[%c0_31, %c0_32] : memref<1x32xf32, #tpu.memory_space<vmem>>, vector<1x32xf32>
      %54 = vector.broadcast %53 : vector<1x32xf32> to vector<16x32xf32>
      %55 = arith.addf %50, %54 : vector<16x32xf32>
      %c0_33 = arith.constant 0 : index
      %c0_34 = arith.constant 0 : index
      %56 = vector.load %arg11[%c0_33, %c0_34] : memref<16x32xf32, #tpu.memory_space<vmem>>, vector<16x32xf32>
      tpu.vector_store %arg11[%c0_33, %c0_34], %55 {strides = array<i32>} : memref<16x32xf32, #tpu.memory_space<vmem>>, vector<16x32xf32>,
    } else {
    }
    %c0 = arith.constant 0 : index
    %c0_1 = arith.constant 0 : index
    %3 = vector.load %arg10[%c0, %c0_1] : memref<16x32xbf16, #tpu.memory_space<vmem>>, vector<16x32xbf16>
    %c0_2 = arith.constant 0 : index
    %c0_3 = arith.constant 0 : index
    %4 = vector.load %arg5[%c0_2, %c0_3] : memref<32x32xbf16, #tpu.memory_space<vmem>>, vector<32x32xbf16>
    %cst = arith.constant dense<0.000000e+00> : vector<16x32xf32>
    %5 = tpu.matmul %3, %4, %cst {dimension_numbers = #tpu.dot_dimension_numbers<[1], [0], [0], [1], [0, 0, 1, 1], [], []>} : vector<16x32xbf16>, vector<32x32xbf16>, vector<16x32xf32> -> vector<16x32xf32>
    %c0_4 = arith.constant 0 : index
    %c0_5 = arith.constant 0 : index
    %6 = vector.load %arg6[%c0_4, %c0_5] : memref<1x32xf32, #tpu.memory_space<vmem>>, vector<1x32xf32>
    %7 = vector.broadcast %6 : vector<1x32xf32> to vector<16x32xf32>
    %8 = arith.addf %5, %7 : vector<16x32xf32>
    %cst_6 = arith.constant 5.000000e-01 : f32
    %9 = vector.broadcast %cst_6 : f32 to vector<16x32xf32>
    %10 = arith.mulf %9, %8 : vector<16x32xf32>
    %cst_7 = arith.constant 0.707106769 : f32
    %11 = vector.broadcast %cst_7 : f32 to vector<16x32xf32>
    %12 = arith.mulf %8, %11 : vector<16x32xf32>
    %13 = math.erf %12 : vector<16x32xf32>
    %cst_8 = arith.constant 1.000000e+00 : f32
    %14 = vector.broadcast %cst_8 : f32 to vector<16x32xf32>
    %15 = arith.addf %14, %13 : vector<16x32xf32>
    %16 = arith.mulf %10, %15 : vector<16x32xf32>
    %c0_9 = arith.constant 0 : index
    %c0_10 = arith.constant 0 : index
    %17 = vector.load %arg11[%c0_9, %c0_10] : memref<16x32xf32, #tpu.memory_space<vmem>>, vector<16x32xf32>
    %18 = arith.truncf %16 : vector<16x32xf32> to vector<16x32xbf16>
    %c0_11 = arith.constant 0 : index
    %c0_12 = arith.constant 0 : index
    %19 = vector.load %arg7[%c0_11, %c0_12] : memref<32x32xbf16, #tpu.memory_space<vmem>>, vector<32x32xbf16>
    %cst_13 = arith.constant dense<0.000000e+00> : vector<16x32xf32>
    %20 = tpu.matmul %18, %19, %cst_13 {dimension_numbers = #tpu.dot_dimension_numbers<[1], [0], [0], [1], [0, 0, 1, 1], [], []>} : vector<16x32xbf16>, vector<32x32xbf16>, vector<16x32xf32> -> vector<16x32xf32>
    %21 = arith.addf %17, %20 : vector<16x32xf32>
    %c0_14 = arith.constant 0 : index
    %c0_15 = arith.constant 0 : index
    %22 = vector.load %arg11[%c0_14, %c0_15] : memref<16x32xf32, #tpu.memory_space<vmem>>, vector<16x32xf32>
    tpu.vector_store %arg11[%c0_14, %c0_15], %21 {strides = array<i32>} : memref<16x32xf32, #tpu.memory_space<vmem>>, vector<16x32xf32>,
    %c0_i32_16 = arith.constant 0 : i32
    %23 = arith.cmpi eq, %arg1, %c0_i32_16 : i32
    %24 = arith.extui %23 : i1 to i32
    %c0_i32_17 = arith.constant 0 : i32
    %25 = arith.cmpi ne, %24, %c0_i32_17 : i32
    scf.if %25 {
      %c0_18 = arith.constant 0 : index
      %c0_19 = arith.constant 0 : index
      %26 = vector.load %arg11[%c0_18, %c0_19] : memref<16x32xf32, #tpu.memory_space<vmem>>, vector<16x32xf32>
      %c0_20 = arith.constant 0 : index
      %c0_21 = arith.constant 0 : index
      %27 = vector.load %arg9[%c0_20, %c0_21] : memref<16x32xf32, #tpu.memory_space<vmem>>, vector<16x32xf32>
      tpu.vector_store %arg9[%c0_20, %c0_21], %26 {strides = array<i32>} : memref<16x32xf32, #tpu.memory_space<vmem>>, vector<16x32xf32>,
    } else {
    }
    return
  }
  func.func @transform_0(%arg0: i32, %arg1: i32) -> (i32, i32) {
    %c0_i32 = arith.constant 0 : i32
    %c0_i32_0 = arith.constant 0 : i32
    return %arg0, %c0_i32 : i32, i32
  }
  func.func @transform_1(%arg0: i32, %arg1: i32) -> (i32, i32) {
    %c0_i32 = arith.constant 0 : i32
    %c0_i32_0 = arith.constant 0 : i32
    %c0_i32_1 = arith.constant 0 : i32
    return %c0_i32, %c0_i32_0 : i32, i32
  }
  func.func @transform_2(%arg0: i32, %arg1: i32) -> (i32, i32) {
    %c0_i32 = arith.constant 0 : i32
    %c0_i32_0 = arith.constant 0 : i32
    %c0_i32_1 = arith.constant 0 : i32
    return %c0_i32, %c0_i32_0 : i32, i32
  }
  func.func @transform_3(%arg0: i32, %arg1: i32) -> (i32, i32) {
    %c0_i32 = arith.constant 0 : i32
    %c0_i32_0 = arith.constant 0 : i32
    return %c0_i32, %arg1 : i32, i32
  }
  func.func @transform_4(%arg0: i32, %arg1: i32) -> (i32, i32) {
    %c0_i32 = arith.constant 0 : i32
    %c0_i32_0 = arith.constant 0 : i32
    return %c0_i32, %arg1 : i32, i32
  }
  func.func @transform_5(%arg0: i32, %arg1: i32) -> (i32, i32) {
    %c0_i32 = arith.constant 0 : i32
    %c0_i32_0 = arith.constant 0 : i32
    return %arg1, %c0_i32 : i32, i32
  }
  func.func @transform_6(%arg0: i32, %arg1: i32) -> (i32, i32) {
    %c0_i32 = arith.constant 0 : i32
    %c0_i32_0 = arith.constant 0 : i32
    %c0_i32_1 = arith.constant 0 : i32
    return %c0_i32, %c0_i32_0 : i32, i32
  }
  func.func @transform_7(%arg0: i32, %arg1: i32) -> (i32, i32) {
    %c0_i32 = arith.constant 0 : i32
    %c0_i32_0 = arith.constant 0 : i32
    return %arg0, %c0_i32 : i32, i32
  }
}

</mosaic_0001>

<bundles_post_ra>
// kernel: simple_res_block.1
= control target key start
LH: loop header
LB: loop body
LE: loop exit
PB: predicated region body
PF: predicated region fallthrough
CT: control target
= control target key end

     0   :  { %vm34_vm0 = vcmask 261120   ;;  %s448_s0 = inlined_call_operand.vmem [shape: f32[16,32], index: 0, kind: input, shape index: {}]   ;;  %s449_s1 = inlined_call_operand.vmem [shape: f32[1,32], index: 1, kind: input, shape index: {}]   ;;  %s450_s2 = inlined_call_operand.vmem [shape: f32[1,32], index: 2, kind: input, shape index: {}]   ;;  %s451_s3 = inlined_call_operand.vmem [shape: bf16[32,32], index: 3, kind: input, shape index: {}]   ;;  %s452_s4 = inlined_call_operand.vmem [shape: f32[1,32], index: 4, kind: input, shape index: {}]   ;;  %s453_s5 = inlined_call_operand.vmem [shape: bf16[32,32], index: 5, kind: input, shape index: {}]   ;;  %s454_s6 = inlined_call_operand.vmem [shape: f32[1,32], index: 6, kind: input, shape index: {}]   ;;  %s455_s7 = inlined_call_operand.hbm [shape: f32[16,32], index: 7, kind: output, shape index: {}]  }
   0x1   :  { %v32_v0 = vld [vmem:[%s448_s0] sm:$0xff]  ;;  %v33_v1 = vld [vmem:[%s448_s0 + $0x8] sm:$0xff] }
   0x2   :  { %v35_v2 = vsel %vm34_vm0, %v32_v0, 0.0  ;;  %v44_v3 = vmul.f32 %v32_v0, %v32_v0  ;;  %v45_v4 = vmul.f32 %v33_v1, %v33_v1  ;;  %v38_v6 = vsel %vm34_vm0, %v33_v1, 0.0 }
   0x3   :  { %36 = vadd.xlane.f32.xlu0 %v35_v2 }
   0x4   :  { %v46_v5 = vsel %vm34_vm0, %v44_v3, 0.0 }
   0x5   :  { %47 = vadd.xlane.f32.xlu1 %v46_v5 }
   0x6   :  { %12 = vsyncpa [#allocation5], 0  ;;  %v49_v7 = vsel %vm34_vm0, %v45_v4, 0.0  ;;  %v323_v8 = vld [vmem:[%s451_s3 + $0x8] sm:$0xff]   ;;  %v358_v9 = vmov 0.0   ;;  %vm359_vm1 = vmmov 0  }
   0x7   :  { %39 = vadd.xlane.f32.xlu0 %v38_v6  ;;  %302 = vmatprep.subr.bf16.mxu0 %v358_v9  ;;  %v324_v10 = vld [vmem:[%s451_s3] sm:$0xff]   ;;  %vm92_vm2 = vcmask 257024   ;;  %v326_v43 = vld [vmem:[%s453_s5 + $0x8] sm:$0xff]  }
   0x8   :  { %306 = vmatprep.mubr.msk.bf16.mxu0 %vm359_vm1, %v358_v9  ;;  %303 = vmatpush3.bf16.msra.mxu0 %v323_v8  ;;  %v281_v27 = vld [vmem:[%s449_s1] ss:$0 sm:$0xff] }
   0x9   :  { %50 = vadd.xlane.f32.xlu1 %v49_v7  ;;  %310 = vmatprep.subr.bf16.mxu1 %v358_v9  ;;  %v282_v29 = vld [vmem:[%s450_s2] ss:$0 sm:$0xff] }
   0xa   :  { %304 = vmatprep.subr.bf16.mxu0 %v358_v9  ;;  %314 = vmatprep.mubr.msk.bf16.mxu1 %vm359_vm1, %v358_v9  ;;  %v285_v33 = vld [vmem:[%s454_s6] ss:$0 sm:$0xff] }
   0xb   :  { %311 = vmatpush3.bf16.msra.mxu1 %v326_v43  ;;  %v327_v44 = vld [vmem:[%s453_s5] sm:$0xff]  }
   0xc   :  { %305 = vmatpush3.bf16.msra.mxu0 %v324_v10  ;;  %312 = vmatprep.subr.bf16.mxu1 %v358_v9  ;;  %v286_v45 = vld [vmem:[%s452_s4] ss:$0 sm:$0xff]  ;;  %s360_s4 = smov [#allocation4]  }
   0xd   :  { %s270_s5 = sshll.u32 %s360_s4, 4  ;;  %s271_s5 = int_to_ptr.vmem [resolvable:$true] %s270_s5 }
   0xe   :  { %s336_s16 = scalar_lea.vmem %s271_s5, 256  ;;  %p341_p1 = scmp.lt.s32.totalorder %s271_s5, %s271_s5 }
   0xf   :  { %313 = vmatpush3.bf16.msra.mxu1 %v327_v44  ;;  %p337_p0 = scmp.ne.s32.totalorder %s271_s5, %s336_s16  ;;  %p342_p2 = scmp.lt.s32.totalorder %s336_s16, %s336_s16 }
  0x11   :  { %p343_p3 = por %p342_p2, %p341_p1 }
  0x13   :  { %p344_p4 = pnand %p343_p3, %p337_p0 }
  0x8c   :  { %v37_v11 = vpop.xlane.xlu0 %36 }
  0x8d   :  { %v42_v12 = vmul.f32 0.03125, %v37_v11 }
  0x8e   :  { %v48_v13 = vpop.xlane.xlu1 %47 }
  0x8f   :  { %v54_v14 = vmul.f32 %v42_v12, %v42_v12  ;;  %v52_v15 = vmul.f32 0.03125, %v48_v13  ;;  %v58_v25 = vsub.f32 %v32_v0, %v42_v12 }
  0x90   :  { %v40_v16 = vpop.xlane.xlu0 %39 }
  0x91   :  { %v56_v17 = vsub.f32 %v52_v15, %v54_v14  ;;  %v43_v18 = vmul.f32 0.03125, %v40_v16 }
  0x92   :  { %v51_v19 = vpop.xlane.xlu1 %50 }
  0x93   :  { %v60_v20 = vadd.f32 1e-05, %v56_v17  ;;  %v55_v21 = vmul.f32 %v43_v18, %v43_v18  ;;  %v53_v22 = vmul.f32 0.03125, %v51_v19  ;;  %v59_v31 = vsub.f32 %v33_v1, %v43_v18 }
  0x95   :  { %328 = vrsqrt.f32 %v60_v20  ;;  %v57_v23 = vsub.f32 %v53_v22, %v55_v21 }
  0x97   :  { %v61_v24 = vadd.f32 1e-05, %v57_v23 }
  0x99   :  { %330 = vrsqrt.f32 %v61_v24 }
  0xa2   :  { %v329_v26 = vpop.eup %328 }
  0xa3   :  { %v64_v28 = vmul.f32 %v329_v26, %v58_v25 }
  0xa5   :  { %v73_v30 = vmul.f32 %v281_v27, %v64_v28 }
  0xa6   :  { %v331_v32 = vpop.eup %330 }
  0xa7   :  { %v82_v34 = vadd.f32 %v282_v29, %v73_v30  ;;  %v65_v35 = vmul.f32 %v331_v32, %v59_v31 }
  0xa9   :  { %v294_v36 = vpack.c.bf16 %v82_v34, %v82_v34  ;;  %v74_v37 = vmul.f32 %v281_v27, %v65_v35  ;;  %v102_v38 = vadd.f32 %v285_v33, %v82_v34 }
  0xab   :  { %93 = vst.msk [vmem:[#allocation2] sm:$0xf] %vm92_vm2, %v294_v36  ;;  %v83_v39 = vadd.f32 %v282_v29, %v74_v37 }
  0xac   :  { %104 = vst.msk [vmem:[#allocation3] sm:$0xff] %vm34_vm0, %v102_v38 }
  0xad   :  { %v295_v40 = vpack.c.bf16 %v83_v39, %v83_v39  ;;  %v103_v41 = vadd.f32 %v285_v33, %v83_v39 }
  0xaf   :  { %94 = vst.msk [vmem:[#allocation2 + $0x4] sm:$0xf] %vm92_vm2, %v295_v40 }
  0xb0   :  { %105 = vst.msk [vmem:[#allocation3 + $0x8] sm:$0xff] %vm34_vm0, %v103_v41 }
  0xb3   :  { %v191_v63 = vld [vmem:[#allocation3] sm:$0xff] }
  0xb6   :  { %v325_v42 = vld [vmem:[#allocation2] sm:$0xff]  }
  0xb7   :  { %307 = vmatmul.mubr.msk.bf16.vlgmr.msra.gmra.mxu0 %vm34_vm0, %v325_v42  ;;  %v192_v3 = vld [vmem:[#allocation3 + $0x8] sm:$0xff] }
 0x177   :  { %v174_v46 = vpop.f32.mrf.mxu0 }
 0x178   :  { %v175_v47 = vadd.f32 %v286_v45, %v174_v46 }
 0x179   :  { %v308_v48 = vpop.f32.mrf.mxu0 }
 0x17a   :  { %v183_v49 = vmul.f32 0.70710677, %v175_v47  ;;  %v181_v57 = vmul.f32 0.5, %v175_v47 }
 0x17b   :  { %v177_v50 = vpop.f32.mrf.mxu0 }
 0x17c   :  { %332 = verf.f32 %v183_v49  ;;  %v178_v51 = vadd.f32 %v286_v45, %v177_v50 }
 0x17d   :  { %v309_v52 = vpop.f32.mrf.mxu0 }
 0x17e   :  { %v184_v53 = vmul.f32 0.70710677, %v178_v51  ;;  %v182_v58 = vmul.f32 0.5, %v178_v51 }
 0x180   :  { %334 = verf.f32 %v184_v53 }
 0x189   :  { %v333_v54 = vpop.eup %332 }
 0x18a   :  { %v187_v55 = vadd.f32 1.0, %v333_v54 }
 0x18c   :  { %v189_v60 = vmul.f32 %v187_v55, %v181_v57 }
 0x18d   :  { %v335_v56 = vpop.eup %334 }
 0x18e   :  { %v188_v59 = vadd.f32 1.0, %v335_v56 }
 0x190   :  { %v190_v61 = vmul.f32 %v188_v59, %v182_v58 }
 0x192   :  { %v193_v62 = vpack.c.bf16 %v190_v61, %v189_v60 }
 0x194   :  { %315 = vmatmul.mubr.msk.bf16.vlgmr.msra.gmra.mxu1 %vm34_vm0, %v193_v62 }
 0x254   :  { %v247_v0 = vpop.f32.mrf.mxu1 }
 0x255   :  { %v254_v1 = vadd.f32 %v247_v0, %v191_v63 }
 0x256   :  { %v316_v2 = vpop.f32.mrf.mxu1 }
 0x257   :  { %256 = vst.msk [vmem:[#allocation3] sm:$0xff] %vm34_vm0, %v254_v1 }
 0x258   :  { %v250_v4 = vpop.f32.mrf.mxu1 }
 0x259   :  { %v255_v5 = vadd.f32 %v250_v4, %v192_v3 }
 0x25a   :  { %v317_v6 = vpop.f32.mrf.mxu1 }
 0x25b   :  { %257 = vst.msk [vmem:[#allocation3 + $0x8] sm:$0xff] %vm34_vm0, %v255_v5 }
 0x25e   :  { %v261_v7 = vld [vmem:[#allocation3] sm:$0xff] }
 0x25f   :  { %263 = vst.msk [vmem:[#allocation4] sm:$0xff] %vm34_vm0, %v261_v7 }
 0x262   :  { %v262_v8 = vld [vmem:[#allocation3 + $0x8] sm:$0xff] }
 0x263   :  { %264 = vst.msk [vmem:[#allocation4 + $0x8] sm:$0xff] %vm34_vm0, %v262_v8 }
 0x264   :  { %347 = shalt.err (!%p344_p4)
}
 0x265   :  { %s361_s17 = smov 128   ;;  %s362_s18 = smov 8  }
 0x266   :  { %276 = dma.vmem_to_hbm [thread:$0]  %s271_s5, 256, %s455_s7, [#allocation5], %s361_s17, %s361_s17, %s362_s18  }
 0x267   :  { %356 = dma.done.wait [#allocation5], 256  }
 0x268   :  { %357 = vsyncadd [#allocation5], 4294967040 }
 0x269   :  { %280 = vsyncpa [#allocation5], 1 }

</bundles_post_ra>
